<compile_context>
chip_gen: v7x
topology: tpu7x:2x2x1
jax: 0.10.0
libtpu: 0.0.40
codegen_flags: <defaults>
</compile_context>

<pallas_src>
import functools

import jax
import jax.numpy as jnp
from jax.experimental import pallas as pl
from jax.experimental.pallas import tpu as pltpu

_LANE = 128
_MAX_BLOCK_ROWS = 1024  # 1024 x 128 x 4B = 512 KiB per buffer


def _sparse_dropout_kernel(x_ref, r_ref, o_ref, *, threshold, scale):
    """Elementwise dropout on one (BLOCK_ROWS, 128) tile.

    keep iff r >= threshold, r ~ Uniform{0, ..., 2^31 - 1},
    threshold = round(p * 2^31)  =>  P(drop) == p (to within 2^-31).
    """
    x = x_ref[...]
    keep = r_ref[...] >= threshold
    o_ref[...] = jnp.where(keep, x * scale, jnp.zeros_like(x))


def sparse_dropout(indices, values, dense_shape, *, p=0.5, key=None, training=True):
    """Pallas implementation of graphgallery SparseDropout.forward.

    Args:
      indices: int array [2, nnz] (COO indices, assumed coalesced).
      values:  float array [nnz].
      dense_shape: tuple, dense shape of the sparse tensor.
      p: dropout probability.
      key: jax PRNG key used for the dropout mask.
      training: if False, identity (like nn.Module eval mode).

    Returns:
      (indices, new_values, dense_shape)
    """
    if not training or p <= 0.0:
        return indices, values, dense_shape
    if p >= 1.0:
        # Avoid inf scale; everything is dropped.
        return indices, jnp.zeros_like(values), dense_shape
    if key is None:
        key = jax.random.PRNGKey(0)

    nnz = values.shape[0]
    pad = (-nnz) % _LANE
    rows = (nnz + pad) // _LANE

    # Lane-major 2-D view of the values.  Free when nnz % 128 == 0.
    v2d = values if pad == 0 else jnp.pad(values, (0, pad))
    v2d = v2d.reshape(rows, _LANE)

    # 31-bit uniform random integers, one per (padded) value.  Generated with
    # jax.random (works on TPU and in interpret mode); the shift/convert fuse
    # with the bits generation in XLA, so the kernel only sees int32.
    rbits = jax.random.bits(key, (rows, _LANE), dtype=jnp.uint32)
    rbits = (rbits >> 1).astype(jnp.int32)

    threshold = min(int(round(p * (1 << 31))), (1 << 31) - 1)
    scale = 1.0 / (1.0 - p)

    # Single full-array block for small inputs (always a legal block shape);
    # 1024-row blocks with double-buffered pipelining for large inputs.
    block_rows = rows if rows <= _MAX_BLOCK_ROWS else _MAX_BLOCK_ROWS
    grid = (pl.cdiv(rows, block_rows),)
    tile = lambda i: (i, 0)

    out2d = pl.pallas_call(
        functools.partial(_sparse_dropout_kernel, threshold=threshold, scale=scale),
        out_shape=jax.ShapeDtypeStruct((rows, _LANE), values.dtype),
        grid=grid,
        in_specs=[
            pl.BlockSpec((block_rows, _LANE), tile),  # values tile
            pl.BlockSpec((block_rows, _LANE), tile),  # random bits tile
        ],
        out_specs=pl.BlockSpec((block_rows, _LANE), tile),
        compiler_params=pltpu.CompilerParams(
            dimension_semantics=("parallel",)),
    )(v2d, rbits)

    drop_val = out2d.reshape(-1)
    if pad != 0:
        drop_val = drop_val[:nnz]
    return indices, drop_val, dense_shape


if __name__ == "__main__":
    key = jax.random.PRNGKey(0)
    k_row, k_col, k_val, k_drop = jax.random.split(key, 4)

    # Small sparse tensor: dense shape (16, 32), nnz = 96 nonzeros.
    dense_shape = (16, 32)
    nnz = 96
    row_idx = jax.random.randint(k_row, (nnz,), 0, dense_shape[0], dtype=jnp.int32)
    col_idx = jax.random.randint(k_col, (nnz,), 0, dense_shape[1], dtype=jnp.int32)
    indices = jnp.stack([row_idx, col_idx], axis=0)              # [2, nnz]
    values = jax.random.normal(k_val, (nnz,), jnp.float32)       # [nnz]

    p = 0.5
    out_idx, out_val, out_shape = sparse_dropout(
        indices, values, dense_shape, p=p, key=k_drop, training=True)
    out_val = jax.block_until_ready(out_val)

    assert out_val.shape == (nnz,)
    assert out_idx.shape == (2, nnz)

    # Dropout semantics: each output value is either 0 or value / (1 - p).
    kept = out_val != 0.0
    expected_kept = values / (1.0 - p)
    ok = jnp.where(kept,
                   jnp.isclose(out_val, expected_kept, rtol=1e-6),
                   out_val == 0.0)
    assert bool(jnp.all(ok))

    # Eval mode is identity.
    _, eval_val, _ = sparse_dropout(indices, values, dense_shape,
                                    p=p, key=k_drop, training=False)
    assert bool(jnp.all(eval_val == values))

    print("KERNEL_OK")
</pallas_src>

<mosaic_0001>
module attributes {stable_mosaic.version = 11 : i64} {
  func.func @_sparse_dropout_kernel(%arg0: i32, %arg1: memref<1x128xf32, #tpu.memory_space<vmem>>, %arg2: memref<1x128xi32, #tpu.memory_space<vmem>>, %arg3: memref<1x128xf32, #tpu.memory_space<vmem>>) attributes {dimension_semantics = [#tpu.dimension_semantics<parallel>], iteration_bounds = array<i64: 1>, scalar_prefetch = 0 : i64, scratch_operands = 0 : i64, tpu.core_type = #tpu.core_type<tc>, window_params = [{transform_indices = @transform_0, window_bounds = array<i64: 1, 128>}, {transform_indices = @transform_1, window_bounds = array<i64: 1, 128>}, {transform_indices = @transform_2, window_bounds = array<i64: 1, 128>}]} {
    %c0 = arith.constant 0 : index
    %c0_0 = arith.constant 0 : index
    %0 = vector.load %arg1[%c0, %c0_0] : memref<1x128xf32, #tpu.memory_space<vmem>>, vector<1x128xf32>
    %c0_1 = arith.constant 0 : index
    %c0_2 = arith.constant 0 : index
    %1 = vector.load %arg2[%c0_1, %c0_2] : memref<1x128xi32, #tpu.memory_space<vmem>>, vector<1x128xi32>
    %c1073741824_i32 = arith.constant 1073741824 : i32
    %2 = vector.broadcast %c1073741824_i32 : i32 to vector<1x128xi32>
    %3 = arith.cmpi sge, %1, %2 : vector<1x128xi32>
    %cst = arith.constant 2.000000e+00 : f32
    %4 = vector.broadcast %cst : f32 to vector<1x128xf32>
    %5 = arith.mulf %0, %4 : vector<1x128xf32>
    %cst_3 = arith.constant 0.000000e+00 : f32
    %6 = vector.broadcast %cst_3 : f32 to vector<1x128xf32>
    %7 = arith.select %3, %5, %6 : vector<1x128xi1>, vector<1x128xf32>
    %c0_4 = arith.constant 0 : index
    %c0_5 = arith.constant 0 : index
    %8 = vector.load %arg3[%c0_4, %c0_5] : memref<1x128xf32, #tpu.memory_space<vmem>>, vector<1x128xf32>
    tpu.vector_store %arg3[%c0_4, %c0_5], %7 {strides = array<i32>} : memref<1x128xf32, #tpu.memory_space<vmem>>, vector<1x128xf32>,
    return
  }
  func.func @transform_0(%arg0: i32) -> (i32, i32) {
    %c0_i32 = arith.constant 0 : i32
    %c0_i32_0 = arith.constant 0 : i32
    return %arg0, %c0_i32 : i32, i32
  }
  func.func @transform_1(%arg0: i32) -> (i32, i32) {
    %c0_i32 = arith.constant 0 : i32
    %c0_i32_0 = arith.constant 0 : i32
    return %arg0, %c0_i32 : i32, i32
  }
  func.func @transform_2(%arg0: i32) -> (i32, i32) {
    %c0_i32 = arith.constant 0 : i32
    %c0_i32_0 = arith.constant 0 : i32
    return %arg0, %c0_i32 : i32, i32
  }
}

</mosaic_0001>

<bundles_post_ra>
// kernel: tpu_custom_call.1
= control target key start
LH: loop header
LB: loop body
LE: loop exit
PB: predicated region body
PF: predicated region fallthrough
CT: control target
= control target key end

     0   :  { %7 = vsyncpa [#allocation3], 0  ;;  %s139_s0 = inlined_call_operand.hbm [shape: f32[1,128], index: 0, kind: input, shape index: {}]   ;;  %s140_s1 = inlined_call_operand.vmem [shape: s32[1,128], index: 1, kind: input, shape index: {}]   ;;  %s141_s2 = inlined_call_operand.hbm [shape: f32[1,128], index: 2, kind: output, shape index: {}]  }
   0x1   :  { %8 = vsyncpa [#allocation4], 0  ;;  %s95_s9 = smov [#allocation2]   ;;  %s47_s13 = scalar_lea.hbm %s139_s0, 16 }
   0x2   :  { %s15_s10 = sshll.u32 %s95_s9, 4  ;;  %p48_p0 = scmp.ne.s32.totalorder %s139_s0, %s47_s13  ;;  %s16_s10 = int_to_ptr.vmem [resolvable:$true] %s15_s10 }
   0x3   :  { %p51_p1 = scmp.lt.u32.totalorder %s47_s13, %s139_s0 }
   0x5   :  { %p53_p2 = pnand %p51_p1, %p48_p0 }
   0x7   :  { %56 = shalt.err (!%p53_p2)
}
   0x8   :  { %s57_s18 = scalar_lea.vmem %s16_s10, 16  ;;  %s61_s19 = scalar_lea.vmem %s16_s10, 32 }
   0x9   :  { %p58_p3 = scmp.ne.s32.totalorder %s16_s10, %s57_s18  ;;  %p62_p4 = scmp.lt.s32.totalorder %s16_s10, %s16_s10 }
   0xa   :  { %p63_p5 = scmp.lt.s32.totalorder %s61_s19, %s57_s18 }
   0xc   :  { %p64_p6 = por %p63_p5, %p62_p4 }
   0xe   :  { %p65_p7 = pnand %p64_p6, %p58_p3 }
  0x10   :  { %68 = shalt.err (!%p65_p7)
}
  0x11   :  { %18 = dma.hbm_to_vmem [thread:$0]  %s139_s0, 16, %s16_s10, [#allocation3]  }
  0x12   :  { %91 = dma.done.wait [#allocation3], 16  }
  0x13   :  { %92 = vsyncadd [#allocation3], 4294967280  ;;  %s96_s22 = smov [#allocation5]   ;;  %v24_v0 = vld [vmem:[#allocation2] sm:$0x1] }
  0x14   :  { %s36_s23 = sshll.u32 %s96_s22, 4  ;;  %v25_v1 = vld [vmem:[%s140_s1] sm:$0x1]  ;;  %v27_v2 = vmul.f32 2.0, %v24_v0  ;;  %s37_s23 = int_to_ptr.vmem [resolvable:$true] %s36_s23 }
  0x15   :  { %vm26_vm0 = vcmp.ge.s32.totalorder %v25_v1, 1073741824  ;;  %s69_s26 = scalar_lea.vmem %s37_s23, 16  ;;  %s73_s27 = scalar_lea.vmem %s37_s23, 32 }
  0x16   :  { %v28_v3 = vsel %vm26_vm0, %v27_v2, 0.0  ;;  %p70_p8 = scmp.ne.s32.totalorder %s37_s23, %s69_s26  ;;  %p74_p9 = scmp.lt.s32.totalorder %s37_s23, %s37_s23 }
  0x17   :  { %29 = vst [vmem:[#allocation5] sm:$0x1] %v28_v3  ;;  %p75_p10 = scmp.lt.s32.totalorder %s73_s27, %s69_s26 }
  0x19   :  { %p76_p11 = por %p75_p10, %p74_p9 }
  0x1b   :  { %p77_p12 = pnand %p76_p11, %p70_p8 }
  0x1d   :  { %80 = shalt.err (!%p77_p12)
}
  0x1e   :  { %s81_s29 = scalar_lea.hbm %s141_s2, 16 }
  0x1f   :  { %p82_p13 = scmp.ne.s32.totalorder %s141_s2, %s81_s29  ;;  %p85_p0 = scmp.lt.u32.totalorder %s81_s29, %s141_s2 }
  0x21   :  { %p87_p1 = pnand %p85_p0, %p82_p13 }
  0x23   :  { %90 = shalt.err (!%p87_p1)
}
  0x24   :  { %39 = dma.vmem_to_hbm [thread:$0]  %s37_s23, 16, %s141_s2, [#allocation4]  }
  0x25   :  { %93 = dma.done.wait [#allocation4], 16  }
  0x26   :  { %94 = vsyncadd [#allocation4], 4294967280 }
  0x27   :  { %43 = vsyncpa [#allocation3], 1 }
  0x28   :  { %44 = vsyncpa [#allocation4], 1 }

</bundles_post_ra>
